<compile_context>
chip_gen: v7x
topology: tpu7x:2x2x1
jax: 0.10.0
libtpu: 0.0.40
codegen_flags: <defaults>
</compile_context>

<pallas_src>
import jax
import jax.numpy as jnp
from jax.experimental import pallas as pl
from jax.experimental.pallas import tpu as pltpu


def _prompt_add_kernel(x_ref, prompt_ref, o_ref):
    # x_ref:      (bn, bf) block of the flattened images
    # prompt_ref: (1, bf)  matching chunk of the flattened prompt row
    # o_ref:      (bn, bf) output block
    o_ref[...] = x_ref[...] + prompt_ref[...]


def _pick_block(n_rows, n_cols, itemsize, target_bytes=2 << 20):
    """Pick a (rows, cols) block: lane-dense, ~target_bytes, honoring (8,128) tiling."""
    # Column tile: full row unless a full row at 8 batch-rows blows the budget
    # (then carve 128-multiple chunks; Pallas masks any ragged tail block).
    if n_cols % 128 != 0 or n_cols * itemsize * min(n_rows, 8) <= target_bytes:
        bf = n_cols
    else:
        bf = max(128, (target_bytes // (min(n_rows, 8) * itemsize) // 128) * 128)
        bf = min(bf, n_cols)
    want = max(1, target_bytes // (bf * itemsize))
    if want >= n_rows:
        bn = n_rows                                    # whole batch in one block
    else:
        bn = min(max(8, (want // 8) * 8), n_rows)      # multiple-of-8 sublanes (or == N)
    return bn, bf


def fixed_patch_prompter(x: jax.Array, patch: jax.Array, image_size: int,
                         prompt_size: int) -> jax.Array:
    """Equivalent of FixedPatchPrompter.forward.

    x:     (N, 3, image_size, image_size) NCHW
    patch: (1, 3, prompt_size, prompt_size) (the nn.Parameter)
    """
    N, C, H, W = x.shape
    assert H == image_size and W == image_size
    assert patch.shape == (1, C, prompt_size, prompt_size)

    F = C * H * W

    # Embed the patch into a flattened (1, F) prompt row with a single pad
    # (no full-size zero image + scatter).
    prompt_row = jnp.pad(
        patch.astype(x.dtype),
        ((0, 0), (0, 0), (0, H - prompt_size), (0, W - prompt_size)),
    ).reshape(1, F)

    x2 = x.reshape(N, F)  # free: contiguous NCHW -> (N, C*H*W)

    bn, bf = _pick_block(N, F, x.dtype.itemsize)
    grid = (pl.cdiv(N, bn), pl.cdiv(F, bf))

    out2 = pl.pallas_call(
        _prompt_add_kernel,
        out_shape=jax.ShapeDtypeStruct((N, F), x.dtype),
        grid=grid,
        in_specs=[
            pl.BlockSpec((bn, bf), lambda i, j: (i, j)),  # x: streamed lane-dense blocks
            pl.BlockSpec((1, bf), lambda i, j: (0, j)),   # prompt: constant row index (DMA'd once)
        ],
        out_specs=pl.BlockSpec((bn, bf), lambda i, j: (i, j)),
        compiler_params=pltpu.CompilerParams(
            dimension_semantics=("parallel", "parallel"),
        ),
    )(x2, prompt_row)

    return out2.reshape(N, C, H, W)


if __name__ == "__main__":
    # Small shapes consistent with the module: 3 channels (hard-coded in the
    # PyTorch module), image_size=16, prompt_size=8, batch=2.
    image_size = 16
    prompt_size = 8
    batch = 2
    channels = 3

    key = jax.random.PRNGKey(0)
    kx, kp = jax.random.split(key)

    x = jax.random.normal(kx, (batch, channels, image_size, image_size),
                          dtype=jnp.float32)
    # Deterministic init of the nn.Parameter (torch.randn equivalent shape).
    patch = jax.random.normal(kp, (1, channels, prompt_size, prompt_size),
                              dtype=jnp.float32)

    out = fixed_patch_prompter(x, patch, image_size, prompt_size)
    out = jax.block_until_ready(out)

    # Reference check in plain JAX (same semantics as the PyTorch forward).
    prompt_ref = jnp.zeros((1, channels, image_size, image_size), jnp.float32)
    prompt_ref = prompt_ref.at[:, :, :prompt_size, :prompt_size].set(patch)
    ref = x + prompt_ref  # broadcast over batch == torch.cat(N * [prompt]) + x
    assert out.shape == x.shape and out.dtype == x.dtype
    assert jnp.allclose(out, ref, atol=1e-6, rtol=1e-6)

    print("KERNEL_OK")
</pallas_src>

<mosaic_0001>
module attributes {stable_mosaic.version = 11 : i64} {
  func.func @_prompt_add_kernel(%arg0: i32, %arg1: i32, %arg2: memref<2x768xf32, #tpu.memory_space<vmem>>, %arg3: memref<1x768xf32, #tpu.memory_space<vmem>>, %arg4: memref<2x768xf32, #tpu.memory_space<vmem>>) attributes {dimension_semantics = [#tpu.dimension_semantics<parallel>, #tpu.dimension_semantics<parallel>], iteration_bounds = array<i64: 1, 1>, scalar_prefetch = 0 : i64, scratch_operands = 0 : i64, tpu.core_type = #tpu.core_type<tc>, window_params = [{transform_indices = @transform_0, window_bounds = array<i64: 2, 768>}, {transform_indices = @transform_1, window_bounds = array<i64: 1, 768>}, {transform_indices = @transform_2, window_bounds = array<i64: 2, 768>}]} {
    %c0 = arith.constant 0 : index
    %c0_0 = arith.constant 0 : index
    %0 = vector.load %arg2[%c0, %c0_0] : memref<2x768xf32, #tpu.memory_space<vmem>>, vector<2x768xf32>
    %c0_1 = arith.constant 0 : index
    %c0_2 = arith.constant 0 : index
    %1 = vector.load %arg3[%c0_1, %c0_2] : memref<1x768xf32, #tpu.memory_space<vmem>>, vector<1x768xf32>
    %2 = vector.broadcast %1 : vector<1x768xf32> to vector<2x768xf32>
    %3 = arith.addf %0, %2 : vector<2x768xf32>
    %c0_3 = arith.constant 0 : index
    %c0_4 = arith.constant 0 : index
    %4 = vector.load %arg4[%c0_3, %c0_4] : memref<2x768xf32, #tpu.memory_space<vmem>>, vector<2x768xf32>
    tpu.vector_store %arg4[%c0_3, %c0_4], %3 {strides = array<i32>} : memref<2x768xf32, #tpu.memory_space<vmem>>, vector<2x768xf32>,
    return
  }
  func.func @transform_0(%arg0: i32, %arg1: i32) -> (i32, i32) {
    %c0_i32 = arith.constant 0 : i32
    return %arg0, %arg1 : i32, i32
  }
  func.func @transform_1(%arg0: i32, %arg1: i32) -> (i32, i32) {
    %c0_i32 = arith.constant 0 : i32
    %c0_i32_0 = arith.constant 0 : i32
    return %c0_i32, %arg1 : i32, i32
  }
  func.func @transform_2(%arg0: i32, %arg1: i32) -> (i32, i32) {
    %c0_i32 = arith.constant 0 : i32
    return %arg0, %arg1 : i32, i32
  }
}

</mosaic_0001>

<bundles_post_ra>
// kernel: tpu_custom_call.1
= control target key start
LH: loop header
LB: loop body
LE: loop exit
PB: predicated region body
PF: predicated region fallthrough
CT: control target
= control target key end

     0   :  { %7 = vsyncpa [#allocation3], 0  ;;  %s242_s0 = inlined_call_operand.hbm [shape: f32[2,768], index: 0, kind: input, shape index: {}]   ;;  %s243_s1 = inlined_call_operand.hbm [shape: f32[1,768], index: 1, kind: input, shape index: {}]   ;;  %s244_s2 = inlined_call_operand.hbm [shape: f32[2,768], index: 2, kind: output, shape index: {}]  }
   0x1   :  { %8 = vsyncpa [#allocation6], 0 }
   0x2   :  { %9 = vsyncpa [#allocation4], 0  ;;  %s187_s9 = smov [#allocation2]   ;;  %s188_s11 = smov [#allocation5]  }
   0x3   :  { %s16_s10 = sshll.u32 %s187_s9, 4  ;;  %s26_s12 = sshll.u32 %s188_s11, 4  ;;  %s17_s10 = int_to_ptr.vmem [resolvable:$true] %s16_s10  ;;  %s27_s12 = int_to_ptr.vmem [resolvable:$true] %s26_s12 }
   0x4   :  { %s115_s15 = scalar_lea.hbm %s242_s0, 192 }
   0x5   :  { %p116_p0 = scmp.ne.s32.totalorder %s242_s0, %s115_s15  ;;  %p119_p1 = scmp.lt.u32.totalorder %s115_s15, %s242_s0 }
   0x7   :  { %p121_p2 = pnand %p119_p1, %p116_p0 }
   0x9   :  { %124 = shalt.err (!%p121_p2)
}
   0xa   :  { %s125_s20 = scalar_lea.vmem %s17_s10, 192  ;;  %p130_p4 = scmp.lt.s32.totalorder %s17_s10, %s17_s10 }
   0xb   :  { %p126_p3 = scmp.ne.s32.totalorder %s17_s10, %s125_s20  ;;  %p131_p5 = scmp.lt.s32.totalorder %s125_s20, %s125_s20 }
   0xd   :  { %p132_p6 = por %p131_p5, %p130_p4 }
   0xf   :  { %p133_p7 = pnand %p132_p6, %p126_p3 }
  0x11   :  { %136 = shalt.err (!%p133_p7)
}
  0x12   :  { %19 = dma.hbm_to_vmem [thread:$0]  %s242_s0, 192, %s17_s10, [#allocation3]  }
  0x13   :  { %s137_s25 = scalar_lea.hbm %s243_s1, 96 }
  0x14   :  { %p138_p8 = scmp.ne.s32.totalorder %s243_s1, %s137_s25  ;;  %p141_p9 = scmp.lt.u32.totalorder %s137_s25, %s243_s1 }
  0x16   :  { %p143_p10 = pnand %p141_p9, %p138_p8 }
  0x18   :  { %146 = shalt.err (!%p143_p10)
}
  0x19   :  { %s147_s30 = scalar_lea.vmem %s27_s12, 96  ;;  %p152_p12 = scmp.lt.s32.totalorder %s27_s12, %s27_s12 }
  0x1a   :  { %p148_p11 = scmp.ne.s32.totalorder %s27_s12, %s147_s30  ;;  %p153_p13 = scmp.lt.s32.totalorder %s147_s30, %s147_s30 }
  0x1c   :  { %p154_p0 = por %p153_p13, %p152_p12 }
  0x1e   :  { %p155_p1 = pnand %p154_p0, %p148_p11 }
  0x20   :  { %158 = shalt.err (!%p155_p1)
}
  0x21   :  { %29 = dma.hbm_to_vmem [thread:$0]  %s243_s1, 96, %s27_s12, [#allocation6]  }
  0x22   :  { %181 = dma.done.wait [#allocation3], 192  }
  0x23   :  { %182 = vsyncadd [#allocation3], 4294967104 }
  0x24   :  { %183 = dma.done.wait [#allocation6], 96  }
  0x25   :  { %184 = vsyncadd [#allocation6], 4294967200  ;;  %v40_v0 = vlaneseq  ;;  %v189_v1 = vmov 1983009808   ;;  %v38_v11 = vld [vmem:[#allocation5] sm:$0x3f] }
  0x26   :  { %v67_v2 = vunpack.c.l.s4 %v189_v1  ;;  %v37_v24 = vld [vmem:[#allocation2 + $0x8] sm:$0xf]  ;;  %v36_v25 = vld [vmem:[#allocation2] sm:$0xff]  ;;  %s190_s1 = smov [#allocation7]  }
  0x27   :  { %v41_v3 = vshrl.u32 %v40_v0, 7  ;;  %s101_s4 = sshll.u32 %s190_s1, 4  ;;  %s102_s4 = int_to_ptr.vmem [resolvable:$true] %s101_s4 }
  0x28   :  { %v68_v4 = vunpack.c.0.s8 %v67_v2  ;;  %s159_s5 = scalar_lea.vmem %s102_s4, 192  ;;  %p164_p3 = scmp.lt.s32.totalorder %s102_s4, %s102_s4 }
  0x29   :  { %v42_v5 = vsub.s32 0, %v41_v3  ;;  %v46_v6 = vsub.s32 1, %v41_v3  ;;  %v50_v7 = vsub.s32 2, %v41_v3  ;;  %v54_v8 = vsub.s32 3, %v41_v3  ;;  %p160_p2 = scmp.ne.s32.totalorder %s102_s4, %s159_s5  ;;  %p165_p4 = scmp.lt.s32.totalorder %s159_s5, %s159_s5 }
  0x2a   :  { %v58_v9 = vsub.s32 4, %v41_v3  ;;  %v62_v10 = vsub.s32 5, %v41_v3  ;;  %v71_v12 = vsub.s32 %v68_v4, %v41_v3 }
  0x2b   :  { %v43_v13 = vrot.slane %v38_v11, %v42_v5  ;;  %v47_v14 = vrot.slane %v38_v11, %v46_v6  ;;  %v51_v15 = vrot.slane %v38_v11, %v50_v7  ;;  %v55_v16 = vrot.slane %v38_v11, %v54_v8  ;;  %p166_p5 = por %p165_p4, %p164_p3 }
  0x2c   :  { %v59_v17 = vrot.slane %v38_v11, %v58_v9  ;;  %v63_v18 = vrot.slane %v38_v11, %v62_v10 }
  0x2d   :  { %v64_v19 = vcombine.low %v43_v13, %v47_v14  ;;  %v65_v20 = vcombine.low %v51_v15, %v55_v16  ;;  %p167_p6 = pnand %p166_p5, %p160_p2 }
  0x2e   :  { %v81_v21 = vcombine.low %v59_v17, %v63_v18 }
  0x2f   :  { %v72_v22 = vrot.slane %v64_v19, %v71_v12  ;;  %v79_v23 = vrot.slane %v65_v20, %v71_v12 }
  0x30   :  { %v88_v26 = vrot.slane %v81_v21, %v71_v12 }
  0x31   :  { %v80_v27 = vcombine.low %v72_v22, %v79_v23 }
  0x32   :  { %v92_v28 = vadd.f32 %v88_v26, %v37_v24 }
  0x33   :  { %v91_v29 = vadd.f32 %v80_v27, %v36_v25 }
  0x34   :  { %94 = vst [vmem:[#allocation7 + $0x8] sm:$0xf] %v92_v28 }
  0x35   :  { %93 = vst [vmem:[#allocation7] sm:$0xff] %v91_v29 }
  0x36   :  { %170 = shalt.err (!%p167_p6)
}
  0x37   :  { %s171_s8 = scalar_lea.hbm %s244_s2, 192 }
  0x38   :  { %p172_p7 = scmp.ne.s32.totalorder %s244_s2, %s171_s8  ;;  %p175_p8 = scmp.lt.u32.totalorder %s171_s8, %s244_s2 }
  0x3a   :  { %p177_p9 = pnand %p175_p8, %p172_p7 }
  0x3c   :  { %180 = shalt.err (!%p177_p9)
}
  0x3d   :  { %104 = dma.vmem_to_hbm [thread:$0]  %s102_s4, 192, %s244_s2, [#allocation4]  }
  0x3e   :  { %185 = dma.done.wait [#allocation4], 192  }
  0x3f   :  { %186 = vsyncadd [#allocation4], 4294967104 }
  0x40   :  { %108 = vsyncpa [#allocation3], 1 }
  0x41   :  { %109 = vsyncpa [#allocation6], 1 }
  0x42   :  { %110 = vsyncpa [#allocation4], 1 }

</bundles_post_ra>
